<compile_context>
chip_gen: v5e
topology: v5e:2x2
jax: 0.10.0
libtpu: 0.0.40
codegen_flags: <defaults>
</compile_context>

<pallas_src>
import functools
import math

import jax
import jax.numpy as jnp
import numpy as np
from jax.experimental import pallas as pl
from jax.experimental.pallas import tpu as pltpu


# ------------------------------- kernel -------------------------------------

def _fused_path_kernel(xx_ref, gW_ref, gc_ref, sw_ref, ss_ref, sb_ref,
                       bW_ref, bS_ref, bB_ref, out_ref, h_ref, *, T):
    """Grid = (path, block).  h_ref: resident (B*T, C) f32 scratch."""
    blk = pl.program_id(1)
    n_blk = pl.num_programs(1)
    BT, C = h_ref.shape
    B = BT // T

    # Boundary masks for the 3-tap conv shifts (flattened (B*T, C) layout):
    # row t==0 of each batch has no t-1 neighbour, row t==T-1 has no t+1.
    rows = jax.lax.broadcasted_iota(jnp.int32, (BT, 1), 0)
    t_idx = rows % T
    mask_up = t_idx != 0          # valid rows for x[t-1]
    mask_dn = t_idx != (T - 1)    # valid rows for x[t+1]

    # ---- stage 0: fused diag-GMM log-likelihood + stem (1x1 conv, BN, ReLU)
    @pl.when(blk == 0)
    def _stem():
        xx = xx_ref[...]                                         # (BT, 2D) bf16
        llk = jnp.dot(xx, gW_ref[0],
                      preferred_element_type=jnp.float32) + gc_ref[0]
        h = jnp.dot(llk.astype(jnp.bfloat16), sw_ref[0],
                    preferred_element_type=jnp.float32)
        h_ref[...] = jnp.maximum(h * ss_ref[0] + sb_ref[0], 0.0)

    # ---- one residual block per grid step (weights streamed per step) ------
    W = bW_ref[0, 0]          # (2, 3, C, C) bf16
    S = bS_ref[0, 0]          # (2, 1, C)    f32
    Sh = bB_ref[0, 0]         # (2, 1, C)    f32

    def conv3(h, w3):
        # h: (BT, C) f32; w3: (3, C, C) bf16.  Accumulate the 3 taps into one
        # f32 result; shifts via XLU roll + boundary masks (no zero-pad bufs).
        acc = jnp.dot(h.astype(jnp.bfloat16), w3[1],
                      preferred_element_type=jnp.float32)
        hm1 = jnp.where(mask_up, pltpu.roll(h, shift=1, axis=0), 0.0)
        acc = acc + jnp.dot(hm1.astype(jnp.bfloat16), w3[0],
                            preferred_element_type=jnp.float32)
        hp1 = jnp.where(mask_dn, pltpu.roll(h, shift=BT - 1, axis=0), 0.0)
        acc = acc + jnp.dot(hp1.astype(jnp.bfloat16), w3[2],
                            preferred_element_type=jnp.float32)
        return acc

    identity = h_ref[...]
    y = conv3(identity, W[0])
    y = jnp.maximum(y * S[0] + Sh[0], 0.0)
    y = conv3(y, W[1])
    y = y * S[1] + Sh[1]
    h_new = jnp.maximum(y + identity, 0.0)
    h_ref[...] = h_new

    # ---- finalize: AdaptiveMaxPool1d(1) over time -> (B, C) ----------------
    @pl.when(blk == n_blk - 1)
    def _pool():
        out_ref[0] = jnp.max(h_new.reshape(B, T, C), axis=1)


# ------------------------------ wrapper --------------------------------------

@jax.jit
def gmm_resnet2p(x_bdt, params, Wc, bc):
    # x_bdt: PyTorch NCL layout (B, D, T)
    B, D, T = x_bdt.shape
    K = params["gmm_W"].shape[-1]
    C = params["stem_w"].shape[-1]
    BT = B * T

    # (B, D, T) -> lane-dense (B*T, D); fuse the two GMM matmuls by feeding
    # [x, x^2] against the stacked weight [A; B].  Shared by both paths.
    xt = jnp.transpose(x_bdt, (0, 2, 1)).reshape(BT, D)
    xx = jnp.concatenate([xt, xt * xt], axis=-1).astype(jnp.bfloat16)

    kernel = functools.partial(_fused_path_kernel, T=T)

    in_specs = [
        pl.BlockSpec((BT, 2 * D), lambda p, b: (0, 0)),                     # xx (shared)
        pl.BlockSpec((1, 2 * D, K), lambda p, b: (p, 0, 0)),                # gmm_W
        pl.BlockSpec((1, 1, K), lambda p, b: (p, 0, 0)),                    # gmm_c
        pl.BlockSpec((1, K, C), lambda p, b: (p, 0, 0)),                    # stem_w
        pl.BlockSpec((1, 1, C), lambda p, b: (p, 0, 0)),                    # stem_scale
        pl.BlockSpec((1, 1, C), lambda p, b: (p, 0, 0)),                    # stem_shift
        pl.BlockSpec((1, 1, 2, 3, C, C), lambda p, b: (p, b, 0, 0, 0, 0)),  # blk_w (streamed)
        pl.BlockSpec((1, 1, 2, 1, C), lambda p, b: (p, b, 0, 0, 0)),        # blk_scale
        pl.BlockSpec((1, 1, 2, 1, C), lambda p, b: (p, b, 0, 0, 0)),        # blk_shift
    ]
    out_specs = pl.BlockSpec((1, B, C), lambda p, b: (p, 0, 0))             # resident per path

    flops = 2 * (2 * BT * (2 * D) * K + 2 * BT * K * C
                 + 6 * 2 * 3 * 2 * BT * C * C)
    bytes_accessed = (int(xx.size) * 2
                      + sum(int(np.prod(v.shape)) * v.dtype.itemsize
                            for v in params.values())
                      + 2 * B * C * 4)

    feats = pl.pallas_call(
        kernel,
        out_shape=jax.ShapeDtypeStruct((2, B, C), jnp.float32),
        grid_spec=pltpu.PrefetchScalarGridSpec(
            num_scalar_prefetch=0,
            grid=(2, 6),
            in_specs=in_specs,
            out_specs=out_specs,
            scratch_shapes=[pltpu.VMEM((BT, C), jnp.float32)],
        ),
        compiler_params=pltpu.CompilerParams(
            dimension_semantics=("parallel", "arbitrary"),
            vmem_limit_bytes=32 * 1024 * 1024,
        ),
        cost_estimate=pl.CostEstimate(flops=flops, transcendentals=0,
                                      bytes_accessed=bytes_accessed),
    )(xx, params["gmm_W"], params["gmm_c"], params["stem_w"],
      params["stem_scale"], params["stem_shift"],
      params["blk_w"], params["blk_scale"], params["blk_shift"])

    # torch.concatenate((x1, x2), dim=1) then Linear(2C, 2); left to XLA
    # (2-lane output would force masked vst inside a Pallas kernel).
    feat = jnp.transpose(feats, (1, 0, 2)).reshape(B, 2 * C)
    return jnp.dot(feat, Wc) + bc


# --------------------------- parameter init ----------------------------------

def init_bn_fold(key, C):
    k1, k2, k3, k4 = jax.random.split(key, 4)
    gamma = jax.random.uniform(k1, (1, C), minval=0.8, maxval=1.2)
    beta = 0.1 * jax.random.normal(k2, (1, C))
    rmean = 0.1 * jax.random.normal(k3, (1, C))
    rvar = jax.random.uniform(k4, (1, C), minval=0.8, maxval=1.2)
    scale = gamma / jnp.sqrt(rvar + 1e-5)
    shift = beta - rmean * scale
    return scale.astype(jnp.float32), shift.astype(jnp.float32)


def init_conv_w(key, cout, cin, ksz):
    bound = 1.0 / math.sqrt(cin * ksz)
    return jax.random.uniform(key, (cout, cin, ksz), minval=-bound,
                              maxval=bound, dtype=jnp.float32)


def init_path_params(key, D, K):
    # K = gmm.size() = number of GMM components = channel width of the path.
    C = K
    keys = jax.random.split(key, 5 + 6 * 4)
    mu = 0.5 * jax.random.normal(keys[0], (K, D))
    var = jax.random.uniform(keys[1], (K, D), minval=0.5, maxval=1.5)
    w = jax.nn.softmax(jax.random.normal(keys[2], (K,)))
    # TODO(synk): DiagGMMLayer source not provided; implemented as the standard
    # per-component diagonal-Gaussian log-likelihood (linear in [x, x^2]).
    gmm_A = (mu / var).T
    gmm_B = (-0.5 / var).T
    gmm_W = jnp.concatenate([gmm_A, gmm_B], axis=0).astype(jnp.float32)   # (2D, K)
    gmm_c = (jnp.log(w)
             - 0.5 * jnp.sum(jnp.log(2.0 * jnp.pi * var), axis=1)
             - 0.5 * jnp.sum(mu * mu / var, axis=1)
             ).reshape(1, K).astype(jnp.float32)

    stem_w = init_conv_w(keys[3], C, K, 1)[:, :, 0].T                     # (K, C)
    stem_scale, stem_shift = init_bn_fold(keys[4], C)

    blk_w, blk_scale, blk_shift = [], [], []
    idx = 5
    for _ in range(6):
        ws, sc_l, sh_l = [], [], []
        for _ in range(2):
            w3 = init_conv_w(keys[idx], C, C, 3); idx += 1
            ws.append(jnp.transpose(w3, (2, 1, 0)))                       # (3, Cin, Cout)
            sc, sh = init_bn_fold(keys[idx], C); idx += 1
            sc_l.append(sc); sh_l.append(sh)
        blk_w.append(jnp.stack(ws))
        blk_scale.append(jnp.stack(sc_l))
        blk_shift.append(jnp.stack(sh_l))

    return dict(gmm_W=gmm_W, gmm_c=gmm_c, stem_w=stem_w,
                stem_scale=stem_scale, stem_shift=stem_shift,
                blk_w=jnp.stack(blk_w),          # (6, 2, 3, C, C)
                blk_scale=jnp.stack(blk_scale),  # (6, 2, 1, C)
                blk_shift=jnp.stack(blk_shift))  # (6, 2, 1, C)


_BF16_KEYS = ("gmm_W", "stem_w", "blk_w")


def stack_paths(p1, p2):
    # Stack both GMM paths on a leading axis of size 2; cast matmul weights
    # to bf16 (MXU-native), keep GMM constant and BN affines in f32.
    out = {}
    for k in p1:
        v = jnp.stack([p1[k], p2[k]])
        if k in _BF16_KEYS:
            v = v.astype(jnp.bfloat16)
        out[k] = v
    return out


# --------------------------- pure-JAX reference -------------------------------

def _ref_conv3(h, W3):
    # h: (B, T, C) f32; W3: (3, C, C) bf16.  Zero-padded Conv1d(k=3, pad=1).
    B, T, C = h.shape
    z = jnp.zeros((B, 1, C), h.dtype)
    xm1 = jnp.concatenate([z, h[:, :-1, :]], axis=1)
    xp1 = jnp.concatenate([h[:, 1:, :], z], axis=1)

    def mm(a, w):
        return jnp.dot(a.reshape(B * T, C).astype(jnp.bfloat16), w,
                       preferred_element_type=jnp.float32).reshape(B, T, C)

    return mm(xm1, W3[0]) + mm(h, W3[1]) + mm(xp1, W3[2])


def ref_forward(x_bdt, params, Wc, bc):
    B, D, T = x_bdt.shape
    C = params["stem_w"].shape[-1]
    xt = jnp.transpose(x_bdt, (0, 2, 1)).reshape(B * T, D)
    xx = jnp.concatenate([xt, xt * xt], axis=-1).astype(jnp.bfloat16)
    feats = []
    for p in range(2):
        llk = (jnp.dot(xx, params["gmm_W"][p],
                       preferred_element_type=jnp.float32) + params["gmm_c"][p])
        h = jnp.dot(llk.astype(jnp.bfloat16), params["stem_w"][p],
                    preferred_element_type=jnp.float32)
        h = jnp.maximum(h * params["stem_scale"][p] + params["stem_shift"][p],
                        0.0).reshape(B, T, C)
        for blk in range(6):
            identity = h
            y = _ref_conv3(h, params["blk_w"][p, blk, 0])
            y = jnp.maximum(y * params["blk_scale"][p, blk, 0]
                            + params["blk_shift"][p, blk, 0], 0.0)
            y = _ref_conv3(y, params["blk_w"][p, blk, 1])
            y = y * params["blk_scale"][p, blk, 1] + params["blk_shift"][p, blk, 1]
            h = jnp.maximum(y + identity, 0.0)
        feats.append(jnp.max(h, axis=1))
    feat = jnp.concatenate(feats, axis=1)
    return jnp.dot(feat, Wc) + bc


# --------------------------------- main ---------------------------------------

if __name__ == "__main__":
    # Small synthetic config (real model: K = C = 512 per path, Linear(1024, 2)).
    B, D, T = 2, 24, 32     # batch, feature dim, time
    K = 32                  # GMM components per path == path channel width

    key = jax.random.PRNGKey(0)
    kx, k1, k2, kc, kb = jax.random.split(key, 5)
    x = jax.random.normal(kx, (B, D, T), dtype=jnp.float32)   # PyTorch NCL input

    params = stack_paths(init_path_params(k1, D, K),   # gmm_bonafide path
                         init_path_params(k2, D, K))   # gmm_spoof path
    bound = 1.0 / math.sqrt(2 * K)
    Wc = jax.random.uniform(kc, (2 * K, 2), minval=-bound, maxval=bound,
                            dtype=jnp.float32)
    bc = jax.random.uniform(kb, (1, 2), minval=-bound, maxval=bound,
                            dtype=jnp.float32)

    out = gmm_resnet2p(x, params, Wc, bc)
    out = jax.block_until_ready(out)

    ref = jax.block_until_ready(jax.jit(ref_forward)(x, params, Wc, bc))
    np.testing.assert_allclose(np.asarray(out), np.asarray(ref),
                               rtol=1e-2, atol=1e-2)
    assert out.shape == (B, 2)
    print("KERNEL_OK")
</pallas_src>

<mosaic_0001>
module attributes {stable_mosaic.version = 11 : i64} {
  func.func @_fused_path_kernel(%arg0: i32, %arg1: i32, %arg2: memref<64x48xbf16, #tpu.memory_space<vmem>>, %arg3: memref<1x48x32xbf16, #tpu.memory_space<vmem>>, %arg4: memref<1x1x32xf32, #tpu.memory_space<vmem>>, %arg5: memref<1x32x32xbf16, #tpu.memory_space<vmem>>, %arg6: memref<1x1x32xf32, #tpu.memory_space<vmem>>, %arg7: memref<1x1x32xf32, #tpu.memory_space<vmem>>, %arg8: memref<1x1x2x3x32x32xbf16, #tpu.memory_space<vmem>>, %arg9: memref<1x1x2x1x32xf32, #tpu.memory_space<vmem>>, %arg10: memref<1x1x2x1x32xf32, #tpu.memory_space<vmem>>, %arg11: memref<1x2x32xf32, #tpu.memory_space<vmem>>, %arg12: memref<64x32xf32, #tpu.memory_space<vmem>>) attributes {dimension_semantics = [#tpu.dimension_semantics<parallel>, #tpu.dimension_semantics<arbitrary>], iteration_bounds = array<i64: 2, 6>, scalar_prefetch = 0 : i64, scratch_operands = 1 : i64, tpu.core_type = #tpu.core_type<tc>, window_params = [{pipeline_mode = #tpu.pipeline_mode<synchronous>, transform_indices = @transform_0, window_bounds = array<i64: 64, 48>}, {transform_indices = @transform_1, window_bounds = array<i64: 1, 48, 32>}, {transform_indices = @transform_2, window_bounds = array<i64: 1, 1, 32>}, {transform_indices = @transform_3, window_bounds = array<i64: 1, 32, 32>}, {transform_indices = @transform_4, window_bounds = array<i64: 1, 1, 32>}, {transform_indices = @transform_5, window_bounds = array<i64: 1, 1, 32>}, {transform_indices = @transform_6, window_bounds = array<i64: 1, 1, 2, 3, 32, 32>}, {transform_indices = @transform_7, window_bounds = array<i64: 1, 1, 2, 1, 32>}, {transform_indices = @transform_8, window_bounds = array<i64: 1, 1, 2, 1, 32>}, {transform_indices = @transform_9, window_bounds = array<i64: 1, 2, 32>}]} {
    %0 = tpu.iota {dimensions = array<i32: 0>} : vector<64x1xi32>
    %c32_i32 = arith.constant 32 : i32
    %c0_i32 = arith.constant 0 : i32
    %1 = arith.cmpi eq, %c32_i32, %c0_i32 : i32
    %c1_i32 = arith.constant 1 : i32
    %2 = arith.select %1, %c1_i32, %c32_i32 : i32
    %3 = vector.broadcast %2 : i32 to vector<64x1xi32>
    %4 = arith.remsi %0, %3 : vector<64x1xi32>
    %c0_i32_0 = arith.constant 0 : i32
    %5 = vector.broadcast %c0_i32_0 : i32 to vector<64x1xi32>
    %6 = arith.cmpi ne, %4, %5 : vector<64x1xi32>
    %c0_i32_1 = arith.constant 0 : i32
    %7 = vector.broadcast %c0_i32_1 : i32 to vector<64x1xi32>
    %8 = arith.cmpi slt, %4, %7 : vector<64x1xi32>
    %c0_i32_2 = arith.constant 0 : i32
    %9 = arith.cmpi slt, %2, %c0_i32_2 : i32
    %10 = vector.broadcast %9 : i1 to vector<64x1xi1>
    %11 = vector.broadcast %10 : vector<64x1xi1> to vector<64x1xi1>
    %12 = arith.xori %8, %11 : vector<64x1xi1>
    %13 = arith.andi %12, %6 : vector<64x1xi1>
    %14 = vector.broadcast %2 : i32 to vector<64x1xi32>
    %15 = arith.addi %4, %14 : vector<64x1xi32>
    %16 = arith.select %13, %15, %4 : vector<64x1xi1>, vector<64x1xi32>
    %c0_i32_3 = arith.constant 0 : i32
    %17 = vector.broadcast %c0_i32_3 : i32 to vector<64x1xi32>
    %18 = arith.cmpi ne, %16, %17 : vector<64x1xi32>
    %c31_i32 = arith.constant 31 : i32
    %19 = vector.broadcast %c31_i32 : i32 to vector<64x1xi32>
    %20 = arith.cmpi ne, %16, %19 : vector<64x1xi32>
    %c0_i32_4 = arith.constant 0 : i32
    %21 = arith.cmpi eq, %arg1, %c0_i32_4 : i32
    %22 = arith.extui %21 : i1 to i32
    %c0_i32_5 = arith.constant 0 : i32
    %23 = arith.cmpi ne, %22, %c0_i32_5 : i32
    scf.if %23 {
      %c0_40 = arith.constant 0 : index
      %c0_41 = arith.constant 0 : index
      %108 = vector.load %arg2[%c0_40, %c0_41] : memref<64x48xbf16, #tpu.memory_space<vmem>>, vector<64x48xbf16>
      %c0_42 = arith.constant 0 : index
      %c0_43 = arith.constant 0 : index
      %c0_44 = arith.constant 0 : index
      %109 = vector.load %arg3[%c0_42, %c0_43, %c0_44] : memref<1x48x32xbf16, #tpu.memory_space<vmem>>, vector<1x48x32xbf16>
      %110 = vector.shape_cast %109 : vector<1x48x32xbf16> to vector<48x32xbf16>
      %cst_45 = arith.constant dense<0.000000e+00> : vector<64x32xf32>
      %111 = tpu.matmul %108, %110, %cst_45 {dimension_numbers = #tpu.dot_dimension_numbers<[1], [0], [0], [1], [0, 0, 1, 1], [], []>} : vector<64x48xbf16>, vector<48x32xbf16>, vector<64x32xf32> -> vector<64x32xf32>
      %c0_46 = arith.constant 0 : index
      %c0_47 = arith.constant 0 : index
      %c0_48 = arith.constant 0 : index
      %112 = vector.load %arg4[%c0_46, %c0_47, %c0_48] : memref<1x1x32xf32, #tpu.memory_space<vmem>>, vector<1x1x32xf32>
      %113 = vector.shape_cast %112 : vector<1x1x32xf32> to vector<1x32xf32>
      %114 = vector.broadcast %113 : vector<1x32xf32> to vector<64x32xf32>
      %115 = arith.addf %111, %114 : vector<64x32xf32>
      %116 = arith.truncf %115 : vector<64x32xf32> to vector<64x32xbf16>
      %c0_49 = arith.constant 0 : index
      %c0_50 = arith.constant 0 : index
      %c0_51 = arith.constant 0 : index
      %117 = vector.load %arg5[%c0_49, %c0_50, %c0_51] : memref<1x32x32xbf16, #tpu.memory_space<vmem>>, vector<1x32x32xbf16>
      %118 = vector.shape_cast %117 : vector<1x32x32xbf16> to vector<32x32xbf16>
      %cst_52 = arith.constant dense<0.000000e+00> : vector<64x32xf32>
      %119 = tpu.matmul %116, %118, %cst_52 {dimension_numbers = #tpu.dot_dimension_numbers<[1], [0], [0], [1], [0, 0, 1, 1], [], []>} : vector<64x32xbf16>, vector<32x32xbf16>, vector<64x32xf32> -> vector<64x32xf32>
      %c0_53 = arith.constant 0 : index
      %c0_54 = arith.constant 0 : index
      %c0_55 = arith.constant 0 : index
      %120 = vector.load %arg6[%c0_53, %c0_54, %c0_55] : memref<1x1x32xf32, #tpu.memory_space<vmem>>, vector<1x1x32xf32>
      %121 = vector.shape_cast %120 : vector<1x1x32xf32> to vector<1x32xf32>
      %122 = vector.broadcast %121 : vector<1x32xf32> to vector<64x32xf32>
      %123 = arith.mulf %119, %122 : vector<64x32xf32>
      %c0_56 = arith.constant 0 : index
      %c0_57 = arith.constant 0 : index
      %c0_58 = arith.constant 0 : index
      %124 = vector.load %arg7[%c0_56, %c0_57, %c0_58] : memref<1x1x32xf32, #tpu.memory_space<vmem>>, vector<1x1x32xf32>
      %125 = vector.shape_cast %124 : vector<1x1x32xf32> to vector<1x32xf32>
      %126 = vector.broadcast %125 : vector<1x32xf32> to vector<64x32xf32>
      %127 = arith.addf %123, %126 : vector<64x32xf32>
      %cst_59 = arith.constant 0.000000e+00 : f32
      %128 = vector.broadcast %cst_59 : f32 to vector<64x32xf32>
      %129 = arith.maximumf %127, %128 : vector<64x32xf32>
      %c0_60 = arith.constant 0 : index
      %c0_61 = arith.constant 0 : index
      %130 = vector.load %arg12[%c0_60, %c0_61] : memref<64x32xf32, #tpu.memory_space<vmem>>, vector<64x32xf32>
      tpu.vector_store %arg12[%c0_60, %c0_61], %129 {strides = array<i32>} : memref<64x32xf32, #tpu.memory_space<vmem>>, vector<64x32xf32>,
    } else {
    }
    %c0 = arith.constant 0 : index
    %c0_6 = arith.constant 0 : index
    %c0_7 = arith.constant 0 : index
    %c0_8 = arith.constant 0 : index
    %c0_9 = arith.constant 0 : index
    %c0_10 = arith.constant 0 : index
    %24 = vector.load %arg8[%c0, %c0_6, %c0_7, %c0_8, %c0_9, %c0_10] : memref<1x1x2x3x32x32xbf16, #tpu.memory_space<vmem>>, vector<1x1x2x3x32x32xbf16>
    %25 = vector.shape_cast %24 : vector<1x1x2x3x32x32xbf16> to vector<2x3x32x32xbf16>
    %c0_11 = arith.constant 0 : index
    %c0_12 = arith.constant 0 : index
    %c0_13 = arith.constant 0 : index
    %c0_14 = arith.constant 0 : index
    %c0_15 = arith.constant 0 : index
    %26 = vector.load %arg9[%c0_11, %c0_12, %c0_13, %c0_14, %c0_15] : memref<1x1x2x1x32xf32, #tpu.memory_space<vmem>>, vector<1x1x2x1x32xf32>
    %27 = vector.shape_cast %26 : vector<1x1x2x1x32xf32> to vector<2x1x32xf32>
    %c0_16 = arith.constant 0 : index
    %c0_17 = arith.constant 0 : index
    %c0_18 = arith.constant 0 : index
    %c0_19 = arith.constant 0 : index
    %c0_20 = arith.constant 0 : index
    %28 = vector.load %arg10[%c0_16, %c0_17, %c0_18, %c0_19, %c0_20] : memref<1x1x2x1x32xf32, #tpu.memory_space<vmem>>, vector<1x1x2x1x32xf32>
    %29 = vector.shape_cast %28 : vector<1x1x2x1x32xf32> to vector<2x1x32xf32>
    %c0_21 = arith.constant 0 : index
    %c0_22 = arith.constant 0 : index
    %30 = vector.load %arg12[%c0_21, %c0_22] : memref<64x32xf32, #tpu.memory_space<vmem>>, vector<64x32xf32>
    %31 = vector.extract_strided_slice %25 {offsets = [0, 0, 0, 0], sizes = [1, 3, 32, 32], strides = [1, 1, 1, 1]} : vector<2x3x32x32xbf16> to vector<1x3x32x32xbf16>
    %32 = vector.shape_cast %31 : vector<1x3x32x32xbf16> to vector<3x32x32xbf16>
    %33 = arith.truncf %30 : vector<64x32xf32> to vector<64x32xbf16>
    %34 = vector.extract_strided_slice %32 {offsets = [1, 0, 0], sizes = [1, 32, 32], strides = [1, 1, 1]} : vector<3x32x32xbf16> to vector<1x32x32xbf16>
    %35 = vector.shape_cast %34 : vector<1x32x32xbf16> to vector<32x32xbf16>
    %cst = arith.constant dense<0.000000e+00> : vector<64x32xf32>
    %36 = tpu.matmul %33, %35, %cst {dimension_numbers = #tpu.dot_dimension_numbers<[1], [0], [0], [1], [0, 0, 1, 1], [], []>} : vector<64x32xbf16>, vector<32x32xbf16>, vector<64x32xf32> -> vector<64x32xf32>
    %c1_i32_23 = arith.constant 1 : i32
    %37 = tpu.dynamic_rotate %30 by %c1_i32_23 dim 0 : vector<64x32xf32>, i32 -> vector<64x32xf32>
    %cst_24 = arith.constant 0.000000e+00 : f32
    %38 = vector.shape_cast %18 : vector<64x1xi1> to vector<64x1xi1>
    %39 = vector.broadcast %38 : vector<64x1xi1> to vector<64x32xi1>
    %40 = vector.broadcast %cst_24 : f32 to vector<64x32xf32>
    %41 = arith.select %39, %37, %40 : vector<64x32xi1>, vector<64x32xf32>
    %42 = arith.truncf %41 : vector<64x32xf32> to vector<64x32xbf16>
    %43 = vector.extract_strided_slice %32 {offsets = [0, 0, 0], sizes = [1, 32, 32], strides = [1, 1, 1]} : vector<3x32x32xbf16> to vector<1x32x32xbf16>
    %44 = vector.shape_cast %43 : vector<1x32x32xbf16> to vector<32x32xbf16>
    %cst_25 = arith.constant dense<0.000000e+00> : vector<64x32xf32>
    %45 = tpu.matmul %42, %44, %cst_25 {dimension_numbers = #tpu.dot_dimension_numbers<[1], [0], [0], [1], [0, 0, 1, 1], [], []>} : vector<64x32xbf16>, vector<32x32xbf16>, vector<64x32xf32> -> vector<64x32xf32>
    %46 = arith.addf %36, %45 : vector<64x32xf32>
    %c63_i32 = arith.constant 63 : i32
    %47 = tpu.dynamic_rotate %30 by %c63_i32 dim 0 : vector<64x32xf32>, i32 -> vector<64x32xf32>
    %cst_26 = arith.constant 0.000000e+00 : f32
    %48 = vector.shape_cast %20 : vector<64x1xi1> to vector<64x1xi1>
    %49 = vector.broadcast %48 : vector<64x1xi1> to vector<64x32xi1>
    %50 = vector.broadcast %cst_26 : f32 to vector<64x32xf32>
    %51 = arith.select %49, %47, %50 : vector<64x32xi1>, vector<64x32xf32>
    %52 = arith.truncf %51 : vector<64x32xf32> to vector<64x32xbf16>
    %53 = vector.extract_strided_slice %32 {offsets = [2, 0, 0], sizes = [1, 32, 32], strides = [1, 1, 1]} : vector<3x32x32xbf16> to vector<1x32x32xbf16>
    %54 = vector.shape_cast %53 : vector<1x32x32xbf16> to vector<32x32xbf16>
    %cst_27 = arith.constant dense<0.000000e+00> : vector<64x32xf32>
    %55 = tpu.matmul %52, %54, %cst_27 {dimension_numbers = #tpu.dot_dimension_numbers<[1], [0], [0], [1], [0, 0, 1, 1], [], []>} : vector<64x32xbf16>, vector<32x32xbf16>, vector<64x32xf32> -> vector<64x32xf32>
    %56 = arith.addf %46, %55 : vector<64x32xf32>
    %57 = vector.extract_strided_slice %27 {offsets = [0, 0, 0], sizes = [1, 1, 32], strides = [1, 1, 1]} : vector<2x1x32xf32> to vector<1x1x32xf32>
    %58 = vector.shape_cast %57 : vector<1x1x32xf32> to vector<1x32xf32>
    %59 = vector.broadcast %58 : vector<1x32xf32> to vector<64x32xf32>
    %60 = arith.mulf %56, %59 : vector<64x32xf32>
    %61 = vector.extract_strided_slice %29 {offsets = [0, 0, 0], sizes = [1, 1, 32], strides = [1, 1, 1]} : vector<2x1x32xf32> to vector<1x1x32xf32>
    %62 = vector.shape_cast %61 : vector<1x1x32xf32> to vector<1x32xf32>
    %63 = vector.broadcast %62 : vector<1x32xf32> to vector<64x32xf32>
    %64 = arith.addf %60, %63 : vector<64x32xf32>
    %cst_28 = arith.constant 0.000000e+00 : f32
    %65 = vector.broadcast %cst_28 : f32 to vector<64x32xf32>
    %66 = arith.maximumf %64, %65 : vector<64x32xf32>
    %67 = vector.extract_strided_slice %25 {offsets = [1, 0, 0, 0], sizes = [1, 3, 32, 32], strides = [1, 1, 1, 1]} : vector<2x3x32x32xbf16> to vector<1x3x32x32xbf16>
    %68 = vector.shape_cast %67 : vector<1x3x32x32xbf16> to vector<3x32x32xbf16>
    %69 = arith.truncf %66 : vector<64x32xf32> to vector<64x32xbf16>
    %70 = vector.extract_strided_slice %68 {offsets = [1, 0, 0], sizes = [1, 32, 32], strides = [1, 1, 1]} : vector<3x32x32xbf16> to vector<1x32x32xbf16>
    %71 = vector.shape_cast %70 : vector<1x32x32xbf16> to vector<32x32xbf16>
    %cst_29 = arith.constant dense<0.000000e+00> : vector<64x32xf32>
    %72 = tpu.matmul %69, %71, %cst_29 {dimension_numbers = #tpu.dot_dimension_numbers<[1], [0], [0], [1], [0, 0, 1, 1], [], []>} : vector<64x32xbf16>, vector<32x32xbf16>, vector<64x32xf32> -> vector<64x32xf32>
    %c1_i32_30 = arith.constant 1 : i32
    %73 = tpu.dynamic_rotate %66 by %c1_i32_30 dim 0 : vector<64x32xf32>, i32 -> vector<64x32xf32>
    %cst_31 = arith.constant 0.000000e+00 : f32
    %74 = vector.shape_cast %18 : vector<64x1xi1> to vector<64x1xi1>
    %75 = vector.broadcast %74 : vector<64x1xi1> to vector<64x32xi1>
    %76 = vector.broadcast %cst_31 : f32 to vector<64x32xf32>
    %77 = arith.select %75, %73, %76 : vector<64x32xi1>, vector<64x32xf32>
    %78 = arith.truncf %77 : vector<64x32xf32> to vector<64x32xbf16>
    %79 = vector.extract_strided_slice %68 {offsets = [0, 0, 0], sizes = [1, 32, 32], strides = [1, 1, 1]} : vector<3x32x32xbf16> to vector<1x32x32xbf16>
    %80 = vector.shape_cast %79 : vector<1x32x32xbf16> to vector<32x32xbf16>
    %cst_32 = arith.constant dense<0.000000e+00> : vector<64x32xf32>
    %81 = tpu.matmul %78, %80, %cst_32 {dimension_numbers = #tpu.dot_dimension_numbers<[1], [0], [0], [1], [0, 0, 1, 1], [], []>} : vector<64x32xbf16>, vector<32x32xbf16>, vector<64x32xf32> -> vector<64x32xf32>
    %82 = arith.addf %72, %81 : vector<64x32xf32>
    %c63_i32_33 = arith.constant 63 : i32
    %83 = tpu.dynamic_rotate %66 by %c63_i32_33 dim 0 : vector<64x32xf32>, i32 -> vector<64x32xf32>
    %cst_34 = arith.constant 0.000000e+00 : f32
    %84 = vector.shape_cast %20 : vector<64x1xi1> to vector<64x1xi1>
    %85 = vector.broadcast %84 : vector<64x1xi1> to vector<64x32xi1>
    %86 = vector.broadcast %cst_34 : f32 to vector<64x32xf32>
    %87 = arith.select %85, %83, %86 : vector<64x32xi1>, vector<64x32xf32>
    %88 = arith.truncf %87 : vector<64x32xf32> to vector<64x32xbf16>
    %89 = vector.extract_strided_slice %68 {offsets = [2, 0, 0], sizes = [1, 32, 32], strides = [1, 1, 1]} : vector<3x32x32xbf16> to vector<1x32x32xbf16>
    %90 = vector.shape_cast %89 : vector<1x32x32xbf16> to vector<32x32xbf16>
    %cst_35 = arith.constant dense<0.000000e+00> : vector<64x32xf32>
    %91 = tpu.matmul %88, %90, %cst_35 {dimension_numbers = #tpu.dot_dimension_numbers<[1], [0], [0], [1], [0, 0, 1, 1], [], []>} : vector<64x32xbf16>, vector<32x32xbf16>, vector<64x32xf32> -> vector<64x32xf32>
    %92 = arith.addf %82, %91 : vector<64x32xf32>
    %93 = vector.extract_strided_slice %27 {offsets = [1, 0, 0], sizes = [1, 1, 32], strides = [1, 1, 1]} : vector<2x1x32xf32> to vector<1x1x32xf32>
    %94 = vector.shape_cast %93 : vector<1x1x32xf32> to vector<1x32xf32>
    %95 = vector.broadcast %94 : vector<1x32xf32> to vector<64x32xf32>
    %96 = arith.mulf %92, %95 : vector<64x32xf32>
    %97 = vector.extract_strided_slice %29 {offsets = [1, 0, 0], sizes = [1, 1, 32], strides = [1, 1, 1]} : vector<2x1x32xf32> to vector<1x1x32xf32>
    %98 = vector.shape_cast %97 : vector<1x1x32xf32> to vector<1x32xf32>
    %99 = vector.broadcast %98 : vector<1x32xf32> to vector<64x32xf32>
    %100 = arith.addf %96, %99 : vector<64x32xf32>
    %101 = arith.addf %100, %30 : vector<64x32xf32>
    %cst_36 = arith.constant 0.000000e+00 : f32
    %102 = vector.broadcast %cst_36 : f32 to vector<64x32xf32>
    %103 = arith.maximumf %101, %102 : vector<64x32xf32>
    %c0_37 = arith.constant 0 : index
    %c0_38 = arith.constant 0 : index
    %104 = vector.load %arg12[%c0_37, %c0_38] : memref<64x32xf32, #tpu.memory_space<vmem>>, vector<64x32xf32>
    tpu.vector_store %arg12[%c0_37, %c0_38], %103 {strides = array<i32>} : memref<64x32xf32, #tpu.memory_space<vmem>>, vector<64x32xf32>,
    %c5_i32 = arith.constant 5 : i32
    %105 = arith.cmpi eq, %arg1, %c5_i32 : i32
    %106 = arith.extui %105 : i1 to i32
    %c0_i32_39 = arith.constant 0 : i32
    %107 = arith.cmpi ne, %106, %c0_i32_39 : i32
    scf.if %107 {
      %108 = vector.shape_cast %103 : vector<64x32xf32> to vector<2x32x32xf32>
      %cst_40 = arith.constant dense<0xFF800000> : vector<2x32xf32>
      %109 = vector.multi_reduction <maximumf>, %108, %cst_40 [1] : vector<2x32x32xf32> to vector<2x32xf32>
      %c0_41 = arith.constant 0 : index
      %c0_42 = arith.constant 0 : index
      %c0_43 = arith.constant 0 : index
      %110 = vector.load %arg11[%c0_41, %c0_42, %c0_43] : memref<1x2x32xf32, #tpu.memory_space<vmem>>, vector<1x2x32xf32>
      %111 = vector.shape_cast %110 : vector<1x2x32xf32> to vector<2x32xf32>
      %112 = vector.shape_cast %109 : vector<2x32xf32> to vector<1x2x32xf32>
      tpu.vector_store %arg11[%c0_41, %c0_42, %c0_43], %112 {strides = array<i32>} : memref<1x2x32xf32, #tpu.memory_space<vmem>>, vector<1x2x32xf32>,
    } else {
    }
    return
  }
  func.func @transform_0(%arg0: i32, %arg1: i32) -> (i32, i32) {
    %c0_i32 = arith.constant 0 : i32
    %c0_i32_0 = arith.constant 0 : i32
    %c0_i32_1 = arith.constant 0 : i32
    return %c0_i32, %c0_i32_0 : i32, i32
  }
  func.func @transform_1(%arg0: i32, %arg1: i32) -> (i32, i32, i32) {
    %c0_i32 = arith.constant 0 : i32
    %c0_i32_0 = arith.constant 0 : i32
    %c0_i32_1 = arith.constant 0 : i32
    return %arg0, %c0_i32, %c0_i32_0 : i32, i32, i32
  }
  func.func @transform_2(%arg0: i32, %arg1: i32) -> (i32, i32, i32) {
    %c0_i32 = arith.constant 0 : i32
    %c0_i32_0 = arith.constant 0 : i32
    %c0_i32_1 = arith.constant 0 : i32
    return %arg0, %c0_i32, %c0_i32_0 : i32, i32, i32
  }
  func.func @transform_3(%arg0: i32, %arg1: i32) -> (i32, i32, i32) {
    %c0_i32 = arith.constant 0 : i32
    %c0_i32_0 = arith.constant 0 : i32
    %c0_i32_1 = arith.constant 0 : i32
    return %arg0, %c0_i32, %c0_i32_0 : i32, i32, i32
  }
  func.func @transform_4(%arg0: i32, %arg1: i32) -> (i32, i32, i32) {
    %c0_i32 = arith.constant 0 : i32
    %c0_i32_0 = arith.constant 0 : i32
    %c0_i32_1 = arith.constant 0 : i32
    return %arg0, %c0_i32, %c0_i32_0 : i32, i32, i32
  }
  func.func @transform_5(%arg0: i32, %arg1: i32) -> (i32, i32, i32) {
    %c0_i32 = arith.constant 0 : i32
    %c0_i32_0 = arith.constant 0 : i32
    %c0_i32_1 = arith.constant 0 : i32
    return %arg0, %c0_i32, %c0_i32_0 : i32, i32, i32
  }
  func.func @transform_6(%arg0: i32, %arg1: i32) -> (i32, i32, i32, i32, i32, i32) {
    %c0_i32 = arith.constant 0 : i32
    %c0_i32_0 = arith.constant 0 : i32
    %c0_i32_1 = arith.constant 0 : i32
    %c0_i32_2 = arith.constant 0 : i32
    %c0_i32_3 = arith.constant 0 : i32
    return %arg0, %arg1, %c0_i32, %c0_i32_0, %c0_i32_1, %c0_i32_2 : i32, i32, i32, i32, i32, i32
  }
  func.func @transform_7(%arg0: i32, %arg1: i32) -> (i32, i32, i32, i32, i32) {
    %c0_i32 = arith.constant 0 : i32
    %c0_i32_0 = arith.constant 0 : i32
    %c0_i32_1 = arith.constant 0 : i32
    %c0_i32_2 = arith.constant 0 : i32
    return %arg0, %arg1, %c0_i32, %c0_i32_0, %c0_i32_1 : i32, i32, i32, i32, i32
  }
  func.func @transform_8(%arg0: i32, %arg1: i32) -> (i32, i32, i32, i32, i32) {
    %c0_i32 = arith.constant 0 : i32
    %c0_i32_0 = arith.constant 0 : i32
    %c0_i32_1 = arith.constant 0 : i32
    %c0_i32_2 = arith.constant 0 : i32
    return %arg0, %arg1, %c0_i32, %c0_i32_0, %c0_i32_1 : i32, i32, i32, i32, i32
  }
  func.func @transform_9(%arg0: i32, %arg1: i32) -> (i32, i32, i32) {
    %c0_i32 = arith.constant 0 : i32
    %c0_i32_0 = arith.constant 0 : i32
    %c0_i32_1 = arith.constant 0 : i32
    return %arg0, %c0_i32, %c0_i32_0 : i32, i32, i32
  }
}

</mosaic_0001>

<bundles_post_ra>
// kernel: gmm_resnet2p.1
= control target key start
LH: loop header
LB: loop body
LE: loop exit
PB: predicated region body
PF: predicated region fallthrough
CT: control target
= control target key end

     0   :  { %s2530_s0 = inlined_call_operand.vmem [shape: bf16[64,48], index: 0, kind: input, shape index: {}]   ;;  %s2531_s1 = inlined_call_operand.vmem [shape: bf16[2,48,32], index: 1, kind: input, shape index: {}]   ;;  %s2532_s2 = inlined_call_operand.vmem [shape: f32[2,1,32], index: 2, kind: input, shape index: {}]   ;;  %s2533_s3 = inlined_call_operand.vmem [shape: bf16[2,32,32], index: 3, kind: input, shape index: {}]   ;;  %s2534_s4 = inlined_call_operand.vmem [shape: f32[2,1,32], index: 4, kind: input, shape index: {}]   ;;  %s2535_s5 = inlined_call_operand.vmem [shape: f32[2,1,32], index: 5, kind: input, shape index: {}]   ;;  %s2536_s6 = inlined_call_operand.hbm [shape: bf16[2,6,2,3,32,32], index: 6, kind: input, shape index: {}]   ;;  %s2537_s7 = inlined_call_operand.vmem [shape: f32[2,6,2,1,32], index: 7, kind: input, shape index: {}]   ;;  %s2538_s8 = inlined_call_operand.vmem [shape: f32[2,6,2,1,32], index: 8, kind: input, shape index: {}]   ;;  %s2539_s9 = inlined_call_operand.vmem [shape: f32[2,2,32], index: 9, kind: output, shape index: {}]  }
   0x1   :  { %2543 = sst [smem:[#allocation8_spill]] %s2530_s0 }
   0x2   :  { %2544 = sst [smem:[#allocation9_spill]] %s2531_s1 }
   0x3   :  { %2545 = sst [smem:[#allocation10_spill]] %s2533_s3 }
   0x4   :  { %2546 = sst [smem:[#allocation11_spill]] %s2537_s7 }
   0x5   :  { %2547 = sst [smem:[#allocation12_spill]] %s2538_s8 }
   0x6   :  { %2548 = sst [smem:[#allocation13_spill]] %s2539_s9 }
   0x7   :  { %14 = vsyncpa [#allocation4], 0 }
   0x8   :  { %16 = vsyncpa [#allocation4 + $0x1], 0  ;;  %s2042_s30 = smov 0   ;;  %s2044_s10 = smov 0  }
   0x9   :  { %s2046_s11 = smov 0   ;;  %s2048_s12 = smov 0  }
   0xa   :  { %s2050_s13 = smov 0   ;;  %s2052_s14 = smov 0  }
   0xb   :  { %s2054_s15 = smov 0   ;;  %s2056_s16 = smov 0  }
   0xc LB: > { %s1643_s17 = sadd.s32 4294967295, %s1988_s16   ;;  %s31_s18 = sadd.s32 1, %s1980_s14  ;;  %s1988_s16 = sphi %s2056_s16, %s22_s16   ;;  %s1984_s15 = sphi %s2054_s15, %s2578_s15   ;;  %s1980_s14 = sphi %s2052_s14, %s2577_s14   ;;  %s1976_s13 = sphi %s2050_s13, %s2576_s13   ;;  %s1972_s12 = sphi %s2048_s12, %s2575_s12   ;;  %s1968_s11 = sphi %s2046_s11, %s2574_s11   ;;  %s1964_s10 = sphi %s2044_s10, %s2573_s10   ;;  %s1960_s30 = sphi %s2042_s30, %s2572_s30  }
   0xd   : > { %p32_p0 = scmp.ge.s32.totalorder %s31_s18, 6  ;;  %s34_s19 = sadd.s32 1, %s1984_s15 }
   0xe   : > { %s194_s20 = sadd.s32 1, %s1968_s11  ;;  %p201_p1 = scmp.ne.s32.totalorder %s1968_s11, %s1964_s10 }
   0xf   : > { %s2580_s18 = smov (%p32_p0, %s31_s18), 0  ;;  %s2582_s19 = smov (!%p32_p0, %s34_s19), %s1984_s15 }
  0x10   : > { %2549 = sst [smem:[#allocation6_spill]] %s2580_s18  ;;  %s190_s21 = ssub.s32 %s1980_s14, %s2580_s18 }
  0x11   : > { %p202_p2 = scmp.eq.s32.totalorder %s1988_s16, 0  ;;  %p36_p3 = scmp.ge.s32.totalorder %s2582_s19, 2 }
  0x12   : > { %p207_p4 = scmp.ne.s32.totalorder %s1964_s10, %s1960_s30  ;;  %p208_p6 = scmp.eq.s32.totalorder %s1643_s17, 0 }
  0x13   : > { %p203_p5 = por %p202_p2, %p201_p1  ;;  %s2584_s19 = smov (%p36_p3, %s2582_s19), 0 }
  0x14   : > { %2550 = sst [smem:[#allocation7_spill]] %s2584_s19  ;;  %p2095_p7 = por %p208_p6, %p207_p4 }
  0x15   : > { %s189_s23 = ssub.s32 %s1984_s15, %s2584_s19  ;;  %p1818_p8 = scmp.lt.s32.totalorder %s1988_s16, 12 }
  0x16   : > { %s191_s24 = sor.u32 %s190_s21, %s189_s23  ;;  %s350_s25 = sand.u32 1, %s1968_s11  }
  0x17   : > { %p192_p9 = scmp.eq.s32.totalorder %s191_s24, 0  ;;  %s1806_s26 = smul.u32 96, %s350_s25 }
  0x18   : > { %p2103_p10 = pnand %p1818_p8, %p203_p5  ;;  %s1807_s29 = smul.u32 24, %s1980_s14 }
  0x19   : > { %s2108_s28 = scalar_select %p192_p9, %s1968_s11, %s194_s20  }
  0x1a   : > { %s1808_s30 = smul.u32 144, %s1984_s15  ;;  %s354_s17 = scalar_lea.vmem [#allocation3], %s1806_s26 }
  0x1b   : > { %s364_s18 = sshll.u32 %s354_s17, 4  ;;  %p1648_p11 = scmp.ge.s32.totalorder %s1988_s16, 1  ;;  %s365_s18 = int_to_ptr.vmem [resolvable:$true] %s364_s18 }
  0x1c   : > { %s359_s19 = sadd.s32 %s1808_s30, %s1807_s29  ;;  %p394_p12 = scmp.lt.s32.totalorder %s1988_s16, 13 }
  0x1d   : > { %s1647_s0 = sshll.u32 %s359_s19, 2  ;;  %s351_s7 = scalar_lea.sflag [#allocation4], %s350_s25 }
  0x1e   : > { %s361_s23 = scalar_lea.hbm %s2536_s6, %s1647_s0  ;;  %s1990_s9 = smov 64  }
  0x1f   : > { %s362_s24 = sshll.u32 %s361_s23, 4  ;;  %s1991_s20 = smov 4   ;;  %s363_s24 = int_to_ptr.hbm [resolvable:$true] %s362_s24 }
  0x20   : > { %1817 = dma.hbm_to_vmem [thread:$0]  (!%p2103_p10), %s363_s24, 1536, %s365_s18, %s351_s7, %s1990_s9, %s1990_s9, %s1991_s20  }
  0x21   : > { %p395_p13 = pnand %p1648_p11, %p394_p12 }
  0x22   : > { %s400_s26 = sand.u32 (!%p395_p13), 1, %s1964_s10  }
  0x23   : > { %398 = sbr.rel (%p395_p13) target bundleno = 866 (0x362), region = 56  ;;  %s401_s19 = scalar_lea.sflag (!%p395_p13), [#allocation4], %s400_s26 }
  0x24   : > { %s1809_s29 = smul.u32 (!%p395_p13), 96, %s400_s26 }
  0x26   : > { %s2120_s30 = scalar_lea.vmem (!%p395_p13), [#allocation3], %s1809_s29 }
  0x28   : > { %1955 = dma.done.wait (%p2095_p7), %s401_s19, 1536  }
  0x29   : > { %1957 = vsyncadd (%p2095_p7), %s401_s19, 4294965760  ;;  %p474_p0 = scmp.lt.s32.totalorder %s1976_s13, 1  ;;  %p495_p1 = scmp.lt.s32.totalorder %s1972_s12, 5  ;;  %v514_v0 = vlaneseq }
  0x2a   : > { %s2553_s1 = sld [smem:[#allocation9_spill]]  ;;  %p1655_p2 = scmp.ne.s32.totalorder %s1972_s12, 0 }
  0x2b   : > { %s2586_s13 = smov (!%p474_p0, %s1976_s13), 1  ;;  %v2131_v1 = vshrl.u32 %v514_v0, 7  ;;  %s2554_s3 = sld [smem:[#allocation10_spill]] }
  0x2c   : > { %s496_s0 = scalar_select %p495_p1, %s1972_s12, 5 }
  0x2d   : > { %s1810_s7 = smul.u32 24, %s2586_s13  ;;  %v518_v2 = vadd.s32 24, %v2131_v1  ;;  %v519_v3 = vadd.s32 32, %v2131_v1  ;;  %v522_v4 = vadd.s32 56, %v2131_v1  ;;  %v527_v5 = vand.u32 31, %v2131_v1  ;;  %s1775_s22 = sshll.u32 %s2586_s13, 4 }
  0x2e   : > { %s1652_s25 = sshll.u32 %s496_s0, 1  ;;  %s1811_s27 = smul.u32 12, %s2586_s13 }
  0x2f   : > { %v548_v6 = vand.u32 31, %v518_v2  ;;  %v555_v7 = vand.u32 31, %v519_v3  ;;  %v576_v8 = vand.u32 31, %v522_v4  ;;  %vm2156_vm0 = vcmp.ne.s32.totalorder %v527_v5, 0  ;;  %s1654_s21 = sshll.u32 %s2586_s13, 1  ;;  %s2563_s23 = sld [smem:[#allocation13_spill]] }
  0x30   : > { %s478_s24 = scalar_lea.vmem %s2553_s1, %s1810_s7  ;;  %s499_s0 = sadd.s32 %s1811_s27, %s1652_s25 }
  0x31   : > { %s2154_s29 = scalar_lea.vmem %s2554_s3, %s1775_s22  ;;  %vm2166_vm1 = vcmp.ne.s32.totalorder %v555_v7, 0  ;;  %vm2170_vm2 = vcmp.ne.s32.totalorder %v548_v6, 31  ;;  %vm2174_vm3 = vcmp.ne.s32.totalorder %v576_v8, 31  ;;  %s2564_s8 = sld [smem:[#allocation11_spill]] }
  0x32   : > { %s2565_s1 = sld [smem:[#allocation12_spill]]  ;;  %s2567_s26 = scalar_lea.vmem (!%p1655_p2), %s2532_s2, %s2586_s13 }
  0x33   : > { %s2569_s7 = scalar_lea.vmem (!%p1655_p2), %s2535_s5, %s2586_s13 }
  0x34   : > { %638 = sbr.rel (%p1655_p2) target bundleno = 402 (0x192), region = 64 }
  0x35   : > { %s2181_s20 = scalar_lea.vmem %s2563_s23, %s1654_s21  ;;  %s2566_s21 = sld [smem:[#allocation8_spill]] (!%p1655_p2) }
  0x37   : > { %s2186_s9 = scalar_lea.vmem %s2564_s8, %s499_s0  ;;  %s2568_s8 = scalar_lea.vmem (!%p1655_p2), %s2534_s4, %s2586_s13 }
  0x38   : > { %s2191_s3 = scalar_lea.vmem %s2565_s1, %s499_s0 }
  0x39   : > { %v1782_v13 = vld [vmem:[%s478_s24 + $0x10] sm:$0xff]  ;;  %v1781_v14 = vld [vmem:[%s478_s24 + $0x8] sm:$0xff]  ;;  %v1780_v15 = vld [vmem:[%s478_s24] sm:$0xff]  ;;  %vm695_vm4 = vcmask 392192   ;;  %vm757_vm5 = vcmask 261120  }
  0x3a   : > { %713 = vmatpush.bf16.msra.mxu0 %v1782_v13  ;;  %1797 = vmatpush.bf16.msra.mxu2 %v1782_v13  ;;  %v1784_v20 = vld [vmem:[%s2154_s29 + $0x8] sm:$0xff]  ;;  %v1783_v21 = vld [vmem:[%s2154_s29] sm:$0xff] }
  0x3b   : > { %v1776_v16 = vld [vmem:[%s2566_s21] sm:$0xff]  ;;  %v1778_v17 = vld [vmem:[%s2566_s21 + $0x10] sm:$0xff]  ;;  %v1777_v18 = vld [vmem:[%s2566_s21 + $0x8] sm:$0xff]  ;;  %776 = vmatpush.bf16.msra.mxu1 %v1784_v20  ;;  %1800 = vmatpush.bf16.msra.mxu3 %v1784_v20 }
  0x3c   : > { %v1779_v19 = vld [vmem:[%s2566_s21 + $0x18] sm:$0xff]  ;;  %v1885_v23 = vld [vmem:[%s2567_s26] ss:$0 sm:$0xff] }
  0x3d   : > { %v1886_v43 = vld [vmem:[%s2568_s8] ss:$0 sm:$0xff] }
  0x3e   : > { %714 = vmatpush.bf16.msra.mxu0 %v1781_v14  ;;  %1798 = vmatpush.bf16.msra.mxu2 %v1781_v14  ;;  %v1887_v44 = vld [vmem:[%s2569_s7] ss:$0 sm:$0xff] }
  0x3f   : > { %777 = vmatpush.bf16.msra.mxu1 %v1783_v21  ;;  %1801 = vmatpush.bf16.msra.mxu3 %v1783_v21 }
  0x42   : > { %715 = vmatpush.bf16.msra.mxu0 %v1780_v15  ;;  %1799 = vmatpush.bf16.msra.mxu2 %v1780_v15 }
  0x45   : > { %1684 = vmatmul.msk.bf16.vlgmr.msra.gmra.mxu0 %vm695_vm4, %v1776_v16  ;;  %1686 = vmatmul.msk.bf16.vlgmr.msra.gmra.mxu2 %vm695_vm4, %v1778_v17 }
  0x55   : > { %1685 = vmatmul.msk.bf16.gmra.mxu0 %vm695_vm4, %v1777_v18  ;;  %1687 = vmatmul.msk.bf16.gmra.mxu2 %vm695_vm4, %v1779_v19 }
  0xc2   : > { %v717_v22 = vpop.f32.mrf.mxu0 }
  0xc3   : > { %v718_v25 = vadd.f32 %v1885_v23, %v717_v22 }
  0xc8   : > { %v727_v29 = vpop.f32.mrf.mxu2 }
  0xc9   : > { %v728_v35 = vadd.f32 %v1885_v23, %v727_v29 }
  0xca   : > { %v719_v24 = vpop.f32.mrf.mxu0 }
  0xcb   : > { %v720_v26 = vadd.f32 %v1885_v23, %v719_v24 }
  0xcd   : > { %v737_v27 = vpack.c.bf16 %v720_v26, %v718_v25 }
  0xcf   : > { %1696 = vmatmul.msk.bf16.vlgmr.msra.gmra.mxu1 %vm757_vm5, %v737_v27 }
  0xd0   : > { %v729_v34 = vpop.f32.mrf.mxu2 }
  0xd1   : > { %v730_v36 = vadd.f32 %v1885_v23, %v729_v34 }
  0xd2   : > { %v722_v28 = vpop.f32.mrf.mxu0 }
  0xd3   : > { %v723_v31 = vadd.f32 %v1885_v23, %v722_v28  ;;  %v739_v38 = vpack.c.bf16 %v730_v36, %v728_v35 }
  0xd8   : > { %v732_v37 = vpop.f32.mrf.mxu2 }
  0xd9   : > { %v733_v40 = vadd.f32 %v1885_v23, %v732_v37 }
  0xda   : > { %v724_v30 = vpop.f32.mrf.mxu0 }
  0xdb   : > { %v725_v32 = vadd.f32 %v1885_v23, %v724_v30 }
  0xdd   : > { %v738_v33 = vpack.c.bf16 %v725_v32, %v723_v31 }
  0xdf   : > { %1697 = vmatmul.msk.bf16.vlgmr.msra.gmra.mxu3 %vm757_vm5, %v738_v33 }
  0xe0   : > { %v734_v39 = vpop.f32.mrf.mxu2 }
  0xe1   : > { %v735_v41 = vadd.f32 %v1885_v23, %v734_v39 }
  0xe3   : > { %v740_v42 = vpack.c.bf16 %v735_v41, %v733_v40 }
  0xef   : > { %1698 = vmatmul.msk.bf16.gmra.mxu3 %vm757_vm5, %v739_v38 }
  0xff   : > { %1699 = vmatmul.msk.bf16.gmra.mxu3 %vm757_vm5, %v740_v42 }
 0x14c   : > { %v779_v45 = vpop.f32.mrf.mxu1 }
 0x14d   : > { %v803_v46 = vmul.f32 %v1886_v43, %v779_v45 }
 0x14f   : > { %v815_v47 = vadd.f32 %v1887_v44, %v803_v46 }
 0x151   : > { %v823_v48 = vmax.f32 %v815_v47, 0.0 }
 0x153   : > { %831 = vst.msk [vmem:[#allocation2] sm:$0xff] %vm757_vm5, %v823_v48 }
 0x154   : > { %v781_v49 = vpop.f32.mrf.mxu1 }
 0x155   : > { %v804_v50 = vmul.f32 %v1886_v43, %v781_v49 }
 0x157   : > { %v816_v51 = vadd.f32 %v1887_v44, %v804_v50 }
 0x159   : > { %v824_v52 = vmax.f32 %v816_v51, 0.0 }
 0x15b   : > { %832 = vst.msk [vmem:[#allocation2 + $0x8] sm:$0xff] %vm757_vm5, %v824_v52 }
 0x162   : > { %v784_v53 = vpop.f32.mrf.mxu3 }
 0x163   : > { %v805_v54 = vmul.f32 %v1886_v43, %v784_v53 }
 0x165   : > { %v817_v55 = vadd.f32 %v1887_v44, %v805_v54 }
 0x167   : > { %v825_v56 = vmax.f32 %v817_v55, 0.0 }
 0x169   : > { %833 = vst.msk [vmem:[#allocation2 + $0x10] sm:$0xff] %vm757_vm5, %v825_v56 }
 0x16a   : > { %v786_v57 = vpop.f32.mrf.mxu3 }
 0x16b   : > { %v806_v58 = vmul.f32 %v1886_v43, %v786_v57 }
 0x16d   : > { %v818_v59 = vadd.f32 %v1887_v44, %v806_v58 }
 0x16f   : > { %v826_v60 = vmax.f32 %v818_v59, 0.0 }
 0x171   : > { %834 = vst.msk [vmem:[#allocation2 + $0x18] sm:$0xff] %vm757_vm5, %v826_v60 }
 0x172   : > { %v789_v61 = vpop.f32.mrf.mxu3 }
 0x173   : > { %v807_v62 = vmul.f32 %v1886_v43, %v789_v61 }
 0x175   : > { %v819_v63 = vadd.f32 %v1887_v44, %v807_v62 }
 0x177   : > { %v827_v0 = vmax.f32 %v819_v63, 0.0 }
 0x179   : > { %835 = vst.msk [vmem:[#allocation2 + $0x20] sm:$0xff] %vm757_vm5, %v827_v0 }
 0x17a   : > { %v791_v2 = vpop.f32.mrf.mxu3 }
 0x17b   : > { %v808_v3 = vmul.f32 %v1886_v43, %v791_v2 }
 0x17d   : > { %v820_v4 = vadd.f32 %v1887_v44, %v808_v3 }
 0x17f   : > { %v828_v5 = vmax.f32 %v820_v4, 0.0 }
 0x181   : > { %836 = vst.msk [vmem:[#allocation2 + $0x28] sm:$0xff] %vm757_vm5, %v828_v5 }
 0x182   : > { %v794_v6 = vpop.f32.mrf.mxu3 }
 0x183   : > { %v809_v7 = vmul.f32 %v1886_v43, %v794_v6 }
 0x185   : > { %v821_v8 = vadd.f32 %v1887_v44, %v809_v7 }
 0x187   : > { %v829_v13 = vmax.f32 %v821_v8, 0.0 }
 0x189   : > { %837 = vst.msk [vmem:[#allocation2 + $0x30] sm:$0xff] %vm757_vm5, %v829_v13 }
 0x18a   : > { %v796_v14 = vpop.f32.mrf.mxu3 }
 0x18b   : > { %v810_v15 = vmul.f32 %v1886_v43, %v796_v14 }
 0x18d   : > { %v822_v16 = vadd.f32 %v1887_v44, %v810_v15 }
 0x18f   : > { %v830_v17 = vmax.f32 %v822_v16, 0.0 }
 0x191   : > { %838 = vst.msk [vmem:[#allocation2 + $0x38] sm:$0xff] %vm757_vm5, %v830_v17 }
 0x192 PF: > { %v1786_v18 = vld [vmem:[%s2120_s30 + $0x8] sm:$0xff]  ;;  %v1788_v19 = vld [vmem:[%s2120_s30 + $0x18] sm:$0xff]  ;;  %v2239_v21 = vld [vmem:[#allocation2 + $0x20] sm:$0xff]  ;;  %vm887_vm6 = vcmp.lt.s32.totalorder %v2131_v1, 1  ;;  %vm936_vm7 = vcmask 261120   ;;  %vm1039_vm8 = vcmp.lt.s32.totalorder %v2131_v1, 7 }
 0x193   : > { %v2237_v20 = vld [vmem:[#allocation2 + $0x18] sm:$0xff]  ;;  %1802 = vmatpush.bf16.msra.mxu2 %v1786_v18  ;;  %1804 = vmatpush.bf16.msra.mxu3 %v1788_v19  ;;  %v1785_v22 = vld [vmem:[%s2120_s30] sm:$0xff]  ;;  %v1787_v23 = vld [vmem:[%s2120_s30 + $0x10] sm:$0xff]  ;;  %v883_v26 = vrot.slane %v2239_v21, 7  ;;  %v1035_v2 = vrot.slane %v2239_v21, 1  ;;  %p1772_p3 = scmp.ne.s32.totalorder %s1972_s12, 5 }
 0x194   : > { %v2244_v24 = vld [vmem:[#allocation2 + $0x28] sm:$0xff]  ;;  %v882_v25 = vrot.slane %v2237_v20, 7  ;;  %955 = vmatpush.bf16.msra.mxu0 %v1786_v18  ;;  %1008 = vmatpush.bf16.msra.mxu1 %v1788_v19  ;;  %v2260_v35 = vld [vmem:[#allocation2] sm:$0xff]  ;;  %v2278_v45 = vld [vmem:[#allocation2 + $0x30] sm:$0xff]  ;;  %v1034_v0 = vrot.slane %v2237_v20, 1 }
 0x195   : > { %v884_v27 = vrot.slane %v2244_v24, 7  ;;  %v1790_v28 = vld [vmem:[%s2120_s30 + $0x28] sm:$0xff]  ;;  %v877_v33 = vpack.c.bf16 %v2244_v24, %v2239_v21  ;;  %v1789_v37 = vld [vmem:[%s2120_s30 + $0x20] sm:$0xff]  ;;  %v879_v39 = vrot.slane %v2260_v35, 7  ;;  %v885_v47 = vrot.slane %v2278_v45, 7  ;;  %v2289_v52 = vld [vmem:[#allocation2 + $0x10] sm:$0xff] }
 0x196   : > { %v891_v29 = vsel %vm887_vm6, %v882_v25, %v883_v26  ;;  %v2264_v38 = vld [vmem:[#allocation2 + $0x8] sm:$0xff]  ;;  %v881_v53 = vrot.slane %v2289_v52, 7  ;;  %v876_v54 = vpack.c.bf16 %v2237_v20, %v2289_v52  ;;  %v1031_v58 = vrot.slane %v2260_v35, 1 }
 0x197   : > { %v890_v31 = vsel %vm887_vm6, %v883_v26, %v884_v27  ;;  %v916_v32 = vsel %vm2166_vm1, %v891_v29, 0.0  ;;  %1803 = vmatpush.bf16.msra.mxu2 %v1785_v22  ;;  %1805 = vmatpush.bf16.msra.mxu3 %v1787_v23  ;;  %v880_v40 = vrot.slane %v2264_v38, 7  ;;  %v875_v42 = vpack.c.bf16 %v2264_v38, %v2260_v35  ;;  %v1794_v26 = vld [vmem:[%s2120_s30 + $0x48] sm:$0xff] }
 0x198   : > { %v2252_v30 = vld [vmem:[#allocation2 + $0x38] sm:$0xff]  ;;  %v922_v34 = vpack.c.bf16 %v890_v31, %v916_v32  ;;  %956 = vmatpush.bf16.msra.mxu0 %v1785_v22  ;;  %1009 = vmatpush.bf16.msra.mxu1 %v1787_v23  ;;  %v889_v49 = vsel %vm887_vm6, %v884_v27, %v885_v47  ;;  %v892_v55 = vsel %vm887_vm6, %v881_v53, %v882_v25  ;;  %v1032_v59 = vrot.slane %v2264_v38, 1  ;;  %v1793_v27 = vld [vmem:[%s2120_s30 + $0x40] sm:$0xff] }
 0x199   : > { %v886_v36 = vrot.slane %v2252_v30, 7  ;;  %v894_v43 = vsel %vm887_vm6, %v879_v39, %v880_v40  ;;  %v878_v51 = vpack.c.bf16 %v2252_v30, %v2278_v45  ;;  %v893_v56 = vsel %vm887_vm6, %v880_v40, %v881_v53  ;;  %v1796_v32 = vld [vmem:[%s2120_s30 + $0x58] sm:$0xff] }
 0x19a   : > { %1710 = vmatmul.msk.bf16.vlgmr.msra.gmra.mxu2 %vm936_vm7, %v922_v34  ;;  %1722 = vmatmul.msk.bf16.vlgmr.msra.gmra.mxu3 %vm936_vm7, %v877_v33  ;;  %v921_v57 = vpack.c.bf16 %v892_v55, %v893_v56  ;;  %v1033_v60 = vrot.slane %v2289_v52, 1  ;;  %v1046_v62 = vsel %vm1039_vm8, %v1031_v58, %v1032_v59  ;;  %v1043_v3 = vsel %vm1039_vm8, %v1034_v0, %v1035_v2  ;;  %v1795_v34 = vld [vmem:[%s2120_s30 + $0x50] sm:$0xff] }
 0x19b   : > { %1106 = vmatpush.bf16.msrb.mxu2 %v1790_v28  ;;  %v895_v41 = vsel %vm887_vm6, %v886_v36, %v879_v39  ;;  %1720 = vmatmul.msk.bf16.vlgmr.msra.gmra.mxu1 %vm936_vm7, %v875_v42  ;;  %v888_v48 = vsel %vm887_vm6, %v885_v47, %v886_v36  ;;  %v1067_v5 = vsel %vm2170_vm2, %v1043_v3, 0.0  ;;  %v1036_v7 = vrot.slane %v2244_v24, 1  ;;  %v2346_v42 = vld [vmem:[%s2186_s9] ss:$0 sm:$0xff] }
 0x19c   : > { %v912_v44 = vsel %vm2156_vm0, %v895_v41, 0.0  ;;  %v923_v50 = vpack.c.bf16 %v888_v48, %v889_v49  ;;  %v1045_v61 = vsel %vm1039_vm8, %v1032_v59, %v1033_v60  ;;  %v1044_v4 = vsel %vm1039_vm8, %v1033_v60, %v1034_v0  ;;  %1282 = vmatpush.bf16.msrb.mxu0 %v1794_v26  ;;  %1363 = vmatpush.bf16.msrb.mxu1 %v1796_v32 }
 0x19d   : > { %v920_v46 = vpack.c.bf16 %v894_v43, %v912_v44  ;;  %v1072_v63 = vpack.c.bf16 %v1045_v61, %v1046_v62  ;;  %v1073_v6 = vpack.c.bf16 %v1067_v5, %v1044_v4  ;;  %v1037_v8 = vrot.slane %v2278_v45, 1 }
 0x19e   : > { %v1042_v14 = vsel %vm1039_vm8, %v1035_v2, %v1036_v7  ;;  %v1038_v16 = vrot.slane %v2252_v30, 1 }
 0x19f   : > { %1107 = vmatpush.bf16.msrb.mxu2 %v1789_v37  ;;  %1708 = vmatmul.msk.bf16.vlgmr.msra.gmra.mxu0 %vm936_vm7, %v920_v46  ;;  %v1041_v13 = vsel %vm1039_vm8, %v1036_v7, %v1037_v8  ;;  %v2350_v46 = vld [vmem:[%s2191_s3] ss:$0 sm:$0xff]  ;;  %v1791_v7 = vld [vmem:[%s2120_s30 + $0x30] sm:$0xff] }
 0x1a0   : > { %v1074_v15 = vpack.c.bf16 %v1041_v13, %v1042_v14  ;;  %v1047_v17 = vsel %vm1039_vm8, %v1038_v16, %v1031_v58  ;;  %v1040_v18 = vsel %vm1039_vm8, %v1037_v8, %v1038_v16  ;;  %1283 = vmatpush.bf16.msrb.mxu0 %v1793_v27  ;;  %1364 = vmatpush.bf16.msrb.mxu1 %v1795_v34 }
 0x1a1   : > { %v1071_v19 = vsel %vm2174_vm3, %v1047_v17, 0.0 }
 0x1a2   : > { %v1075_v22 = vpack.c.bf16 %v1071_v19, %v1040_v18 }
 0x1aa   : > { %1711 = vmatmul.msk.bf16.gmra.mxu2 %vm936_vm7, %v923_v50  ;;  %1723 = vmatmul.msk.bf16.gmra.mxu3 %vm936_vm7, %v878_v51  ;;  %v1792_v51 = vld [vmem:[%s2120_s30 + $0x38] sm:$0xff] }
 0x1ab   : > { %1721 = vmatmul.msk.bf16.gmra.mxu1 %vm936_vm7, %v876_v54  ;;  %1229 = vmatpush.bf16.msrb.mxu3 %v1792_v51 }
 0x1af   : > { %1709 = vmatmul.msk.bf16.gmra.mxu0 %vm936_vm7, %v921_v57  ;;  %1230 = vmatpush.bf16.msrb.mxu3 %v1791_v7 }
 0x1ba   : > { %1732 = vmatmul.msk.bf16.vlgmr.msrb.gmra.mxu2 %vm936_vm7, %v1072_v63 }
 0x1ca   : > { %1733 = vmatmul.msk.bf16.gmra.mxu2 %vm936_vm7, %v1073_v6 }
 0x1da   : > { %1734 = vmatmul.msk.bf16.gmra.mxu2 %vm936_vm7, %v1074_v15 }
 0x1ea   : > { %1735 = vmatmul.msk.bf16.gmra.mxu2 %vm936_vm7, %v1075_v22 }
 0x218   : > { %v1011_v31 = vpop.f32.mrf.mxu1 }
 0x21c   : > { %v958_v29 = vpop.f32.mrf.mxu0 }
 0x21d   : > { %v968_v23 = vpop.f32.mrf.mxu2  ;;  %v1012_v39 = vadd.f32 %v1011_v31, %v958_v29  ;;  %v1021_v4 = vpop.f32.mrf.mxu3 }
 0x21e   : > { %v1022_v26 = vadd.f32 %v1021_v4, %v968_v23 }
 0x220   : > { %v1013_v37 = vpop.f32.mrf.mxu1 }
 0x224   : > { %v960_v36 = vpop.f32.mrf.mxu0 }
 0x225   : > { %v2335_v25 = vpop.f32.mrf.mxu2  ;;  %v1014_v43 = vadd.f32 %v1013_v37, %v960_v36  ;;  %v1023_v29 = vpop.f32.mrf.mxu3 }
 0x228   : > { %v1016_v49 = vpop.f32.mrf.mxu1 }
 0x22c   : > { %v963_v47 = vpop.f32.mrf.mxu0 }
 0x22d   : > { %v2339_v28 = vpop.f32.mrf.mxu2  ;;  %v1017_v56 = vadd.f32 %v1016_v49, %v963_v47  ;;  %v1026_v47 = vpop.f32.mrf.mxu3 }
 0x230   : > { %v1018_v63 = vpop.f32.mrf.mxu1 }
 0x234   : > { %v965_v62 = vpop.f32.mrf.mxu0 }
 0x235   : > { %v2342_v33 = vpop.f32.mrf.mxu2  ;;  %v1019_v3 = vadd.f32 %v1018_v63, %v965_v62  ;;  %v1028_v62 = vpop.f32.mrf.mxu3 }
 0x236   : > { %v1029_v11 = vadd.f32 %v1028_v62, %v2342_v33 }
 0x23d   : > { %v1109_v40 = vpop.f32.mrf.mxu2 }
 0x23e   : > { %v1129_v41 = vadd.f32 %v1109_v40, %v1012_v39  ;;  %v1024_v39 = vadd.f32 %v1023_v29, %v2335_v25 }
 0x240   : > { %v1140_v44 = vmul.f32 %v2346_v42, %v1129_v41 }
 0x242   : > { %v1151_v53 = vadd.f32 %v2350_v46, %v1140_v44 }
 0x244   : > { %v2356_v57 = vmax.f32 %v1151_v53, 0.0 }
 0x245   : > { %v1111_v48 = vpop.f32.mrf.mxu2 }
 0x246   : > { %v1130_v50 = vadd.f32 %v1111_v48, %v1014_v43  ;;  %v1305_v13 = vrot.slane %v2356_v57, 1 }
 0x248   : > { %v1141_v54 = vmul.f32 %v2346_v42, %v1130_v50 }
 0x24a   : > { %v1152_v55 = vadd.f32 %v2350_v46, %v1141_v54  ;;  %v1027_v54 = vadd.f32 %v1026_v47, %v2339_v28 }
 0x24c   : > { %v2358_v58 = vmax.f32 %v1152_v55, 0.0 }
 0x24d   : > { %v1114_v59 = vpop.f32.mrf.mxu2 }
 0x24e   : > { %v1131_v60 = vadd.f32 %v1114_v59, %v1017_v56  ;;  %v1167_v61 = vpack.c.bf16 %v2358_v58, %v2356_v57  ;;  %v1306_v5 = vrot.slane %v2358_v58, 1  ;;  %v1172_v33 = vrot.slane %v2358_v58, 7 }
 0x250   : > { %v1142_v0 = vmul.f32 %v2346_v42, %v1131_v60  ;;  %1756 = vmatmul.msk.bf16.vlgmr.msrb.gmra.mxu0 %vm936_vm7, %v1167_v61  ;;  %v1319_v18 = vsel %vm1039_vm8, %v1305_v13, %v1306_v5 }
 0x252   : > { %v1153_v2 = vadd.f32 %v2350_v46, %v1142_v0 }
 0x254   : > { %v2366_v6 = vmax.f32 %v1153_v2, 0.0 }
 0x255   : > { %v1116_v8 = vpop.f32.mrf.mxu2 }
 0x256   : > { %v1307_v14 = vrot.slane %v2366_v6, 1  ;;  %v1132_v15 = vadd.f32 %v1116_v8, %v1019_v3  ;;  %v1173_v9 = vrot.slane %v2366_v6, 7 }
 0x258   : > { %v1143_v16 = vmul.f32 %v2346_v42, %v1132_v15  ;;  %v1318_v17 = vsel %vm1039_vm8, %v1306_v5, %v1307_v14 }
 0x259   : > { %v1329_v19 = vpack.c.bf16 %v1318_v17, %v1319_v18  ;;  %v1171_v17 = vrot.slane %v2356_v57, 7  ;;  %v1184_v57 = vsel %vm887_vm6, %v1172_v33, %v1173_v9 }
 0x25a   : > { %v1154_v22 = vadd.f32 %v2350_v46, %v1143_v16 }
 0x25b   : > { %1768 = vmatmul.msk.bf16.vlgmr.msrb.gmra.mxu1 %vm936_vm7, %v1329_v19 }
 0x25c   : > { %v2380_v27 = vmax.f32 %v1154_v22, 0.0 }
 0x25d   : > { %v1119_v31 = vpop.f32.mrf.mxu2 }
 0x25e   : > { %v1133_v32 = vadd.f32 %v1119_v31, %v1022_v26  ;;  %v1168_v34 = vpack.c.bf16 %v2380_v27, %v2366_v6  ;;  %v1308_v23 = vrot.slane %v2380_v27, 1  ;;  %v1185_v26 = vsel %vm887_vm6, %v1171_v17, %v1172_v33 }
 0x260   : > { %v1144_v36 = vmul.f32 %v2346_v42, %v1133_v32  ;;  %1757 = vmatmul.msk.bf16.gmra.mxu0 %vm936_vm7, %v1168_v34  ;;  %v1317_v50 = vsel %vm1039_vm8, %v1307_v14, %v1308_v23 }
 0x262   : > { %v1155_v37 = vadd.f32 %v2350_v46, %v1144_v36  ;;  %v1174_v36 = vrot.slane %v2380_v27, 7 }
 0x264   : > { %v1163_v40 = vmax.f32 %v1155_v37, 0.0  ;;  %v1183_v37 = vsel %vm887_vm6, %v1173_v9, %v1174_v36 }
 0x265   : > { %v1121_v41 = vpop.f32.mrf.mxu2 }
 0x266   : > { %v1309_v43 = vrot.slane %v1163_v40, 1  ;;  %v1134_v44 = vadd.f32 %v1121_v41, %v1024_v39  ;;  %v1175_v39 = vrot.slane %v1163_v40, 7 }
 0x268   : > { %v1145_v48 = vmul.f32 %v2346_v42, %v1134_v44  ;;  %v1316_v49 = vsel %vm1039_vm8, %v1308_v23, %v1309_v43  ;;  %v1182_v12 = vsel %vm887_vm6, %v1174_v36, %v1175_v39 }
 0x269   : > { %v1324_v51 = vsel %vm2170_vm2, %v1316_v49, 0.0  ;;  %v1191_v6 = vsel %vm2166_vm1, %v1182_v12, 0.0 }
 0x26a   : > { %v1156_v25 = vadd.f32 %v2350_v46, %v1145_v48  ;;  %v1330_v53 = vpack.c.bf16 %v1324_v51, %v1317_v50 }
 0x26c   : > { %v1164_v55 = vmax.f32 %v1156_v25, 0.0  ;;  %1769 = vmatmul.msk.bf16.gmra.mxu1 %vm936_vm7, %v1330_v53  ;;  %v2449_v53 = vld [vmem:[%s2186_s9 + $0x1] ss:$0 sm:$0xff] }
 0x26d   : > { %v1124_v56 = vpop.f32.mrf.mxu2 }
 0x26e   : > { %v1135_v59 = vadd.f32 %v1124_v56, %v1027_v54  ;;  %v1169_v60 = vpack.c.bf16 %v1164_v55, %v1163_v40  ;;  %v1310_v2 = vrot.slane %v1164_v55, 1  ;;  %v1176_v41 = vrot.slane %v1164_v55, 7  ;;  %v2452_v55 = vld [vmem:[%s2191_s3 + $0x1] ss:$0 sm:$0xff] }
 0x270   : > { %v1146_v61 = vmul.f32 %v2346_v42, %v1135_v59  ;;  %1758 = vmatmul.msk.bf16.gmra.mxu0 %vm936_vm7, %v1169_v60  ;;  %v1315_v8 = vsel %vm1039_vm8, %v1309_v43, %v1310_v2  ;;  %v1181_v27 = vsel %vm887_vm6, %v1175_v39, %v1176_v41 }
 0x271   : > { %v1197_v23 = vpack.c.bf16 %v1181_v27, %v1191_v6 }
 0x272   : > { %v1157_v63 = vadd.f32 %v2350_v46, %v1146_v61 }
 0x274   : > { %v1165_v0 = vmax.f32 %v1157_v63, 0.0 }
 0x275   : > { %v1126_v3 = vpop.f32.mrf.mxu2 }
 0x276   : > { %v1136_v4 = vadd.f32 %v1126_v3, %v1029_v11  ;;  %v1311_v28 = vrot.slane %v1165_v0, 1  ;;  %v1177_v43 = vrot.slane %v1165_v0, 7 }
 0x278   : > { %v1147_v5 = vmul.f32 %v2346_v42, %v1136_v4  ;;  %v1314_v7 = vsel %vm1039_vm8, %v1310_v2, %v1311_v28  ;;  %v1180_v40 = vsel %vm887_vm6, %v1176_v41, %v1177_v43 }
 0x279   : > { %v1331_v14 = vpack.c.bf16 %v1314_v7, %v1315_v8 }
 0x27a   : > { %v1158_v15 = vadd.f32 %v2350_v46, %v1147_v5 }
 0x27c   : > { %v1166_v16 = vmax.f32 %v1158_v15, 0.0  ;;  %1770 = vmatmul.msk.bf16.gmra.mxu1 %vm936_vm7, %v1331_v14 }
 0x27e   : > { %v1178_v18 = vrot.slane %v1166_v16, 7  ;;  %v1170_v19 = vpack.c.bf16 %v1166_v16, %v1165_v0  ;;  %v1312_v22 = vrot.slane %v1166_v16, 1 }
 0x280   : > { %1759 = vmatmul.msk.bf16.gmra.mxu0 %vm936_vm7, %v1170_v19  ;;  %v1186_v42 = vsel %vm887_vm6, %v1178_v18, %v1171_v17  ;;  %v1320_v58 = vsel %vm1039_vm8, %v1312_v22, %v1305_v13  ;;  %v1313_v31 = vsel %vm1039_vm8, %v1311_v28, %v1312_v22  ;;  %v1196_v13 = vpack.c.bf16 %v1183_v37, %v1184_v57 }
 0x281   : > { %v1187_v46 = vsel %vm2156_vm0, %v1186_v42, 0.0  ;;  %v1328_v32 = vsel %vm2174_vm3, %v1320_v58, 0.0  ;;  %v1179_v44 = vsel %vm887_vm6, %v1177_v43, %v1178_v18 }
 0x282   : > { %v1195_v29 = vpack.c.bf16 %v1185_v26, %v1187_v46  ;;  %v1332_v34 = vpack.c.bf16 %v1328_v32, %v1313_v31  ;;  %v1198_v47 = vpack.c.bf16 %v1179_v44, %v1180_v40 }
 0x284   : > { %1744 = vmatmul.msk.bf16.vlgmr.msrb.gmra.mxu3 %vm936_vm7, %v1195_v29 }
 0x28c   : > { %1771 = vmatmul.msk.bf16.gmra.mxu1 %vm936_vm7, %v1332_v34 }
 0x294   : > { %1745 = vmatmul.msk.bf16.gmra.mxu3 %vm936_vm7, %v1196_v13 }
 0x2a4   : > { %1746 = vmatmul.msk.bf16.gmra.mxu3 %vm936_vm7, %v1197_v23 }
 0x2b4   : > { %1747 = vmatmul.msk.bf16.gmra.mxu3 %vm936_vm7, %v1198_v47 }
 0x2cd   : > { %v1285_v48 = vpop.f32.mrf.mxu0 }
 0x2d5   : > { %v1287_v50 = vpop.f32.mrf.mxu0 }
 0x2d8   : > { %v1366_v49 = vpop.f32.mrf.mxu1 }
 0x2dd   : > { %v1290_v59 = vpop.f32.mrf.mxu0 }
 0x2e0   : > { %v1368_v51 = vpop.f32.mrf.mxu1 }
 0x2e5   : > { %v1292_v4 = vpop.f32.mrf.mxu0 }
 0x2e9   : > { %v1371_v60 = vpop.f32.mrf.mxu1 }
 0x2ed   : > { %v1295_v19 = vpop.f32.mrf.mxu0 }
 0x2f5   : > { %v1297_v36 = vpop.f32.mrf.mxu0 }
 0x2fd   : > { %v1300_v27 = vpop.f32.mrf.mxu0 }
 0x307   : > { %v1232_v10 = vpop.f32.mrf.mxu3 }
 0x308   : > { %v1286_v25 = vadd.f32 %v1285_v48, %v1232_v10 }
 0x30a   : > { %v1386_v54 = vadd.f32 %v1366_v49, %v1286_v25 }
 0x30c   : > { %v1397_v56 = vmul.f32 %v2449_v53, %v1386_v54 }
 0x30e   : > { %v1408_v1 = vadd.f32 %v2452_v55, %v1397_v56 }
 0x30f   : > { %v1234_v61 = vpop.f32.mrf.mxu3 }
 0x310   : > { %v2457_v62 = vadd.f32 %v1408_v1, %v2260_v35  ;;  %v1288_v63 = vadd.f32 %v1287_v50, %v1234_v61  ;;  %v1373_v35 = vpop.f32.mrf.mxu1  ;;  %v1302_v50 = vpop.f32.mrf.mxu0 }
 0x312   : > { %v1424_v11 = vmax.f32 %v2457_v62, 0.0  ;;  %v1387_v0 = vadd.f32 %v1368_v51, %v1288_v63 }
 0x314   : > { %1432 = vst.msk [vmem:[#allocation2] sm:$0xff] %vm936_vm7, %v1424_v11  ;;  %v1398_v2 = vmul.f32 %v2449_v53, %v1387_v0 }
 0x316   : > { %v1409_v3 = vadd.f32 %v2452_v55, %v1398_v2 }
 0x317   : > { %v1237_v28 = vpop.f32.mrf.mxu3 }
 0x318   : > { %v2466_v5 = vadd.f32 %v1409_v3, %v2264_v38  ;;  %v1291_v7 = vadd.f32 %v1290_v59, %v1237_v28  ;;  %v1376_v38 = vpop.f32.mrf.mxu1 }
 0x31a   : > { %v1425_v8 = vmax.f32 %v2466_v5, 0.0  ;;  %v1388_v14 = vadd.f32 %v1371_v60, %v1291_v7 }
 0x31c   : > { %1433 = vst.msk [vmem:[#allocation2 + $0x8] sm:$0xff] %vm936_vm7, %v1425_v8  ;;  %v1399_v15 = vmul.f32 %v2449_v53, %v1388_v14 }
 0x31e   : > { %v1410_v16 = vadd.f32 %v2452_v55, %v1399_v15 }
 0x31f   : > { %v1239_v33 = vpop.f32.mrf.mxu3 }
 0x320   : > { %v1418_v17 = vadd.f32 %v1410_v16, %v2289_v52  ;;  %v1293_v18 = vadd.f32 %v1292_v4, %v1239_v33  ;;  %v1378_v9 = vpop.f32.mrf.mxu1 }
 0x322   : > { %v1426_v42 = vmax.f32 %v1418_v17, 0.0  ;;  %v1389_v22 = vadd.f32 %v1373_v35, %v1293_v18 }
 0x324   : > { %1434 = vst.msk [vmem:[#allocation2 + $0x10] sm:$0xff] %vm936_vm7, %v1426_v42  ;;  %v1400_v26 = vmul.f32 %v2449_v53, %v1389_v22 }
 0x326   : > { %v1411_v46 = vadd.f32 %v2452_v55, %v1400_v26 }
 0x327   : > { %v1242_v29 = vpop.f32.mrf.mxu3 }
 0x328   : > { %v1419_v58 = vadd.f32 %v1411_v46, %v2237_v20  ;;  %v1296_v31 = vadd.f32 %v1295_v19, %v1242_v29  ;;  %v1381_v23 = vpop.f32.mrf.mxu1 }
 0x32a   : > { %v1427_v32 = vmax.f32 %v1419_v58, 0.0  ;;  %v1390_v34 = vadd.f32 %v1376_v38, %v1296_v31 }
 0x32c   : > { %1435 = vst.msk [vmem:[#allocation2 + $0x18] sm:$0xff] %vm936_vm7, %v1427_v32  ;;  %v1401_v52 = vmul.f32 %v2449_v53, %v1390_v34 }
 0x32e   : > { %v1412_v37 = vadd.f32 %v2452_v55, %v1401_v52 }
 0x32f   : > { %v1244_v57 = vpop.f32.mrf.mxu3 }
 0x330   : > { %v1420_v13 = vadd.f32 %v1412_v37, %v2239_v21  ;;  %v1298_v39 = vadd.f32 %v1297_v36, %v1244_v57  ;;  %v1383_v54 = vpop.f32.mrf.mxu1 }
 0x332   : > { %v1428_v41 = vmax.f32 %v1420_v13, 0.0  ;;  %v1391_v12 = vadd.f32 %v1378_v9, %v1298_v39 }
 0x334   : > { %1436 = vst.msk [vmem:[#allocation2 + $0x20] sm:$0xff] %vm936_vm7, %v1428_v41  ;;  %v1402_v20 = vmul.f32 %v2449_v53, %v1391_v12 }
 0x336   : > { %v1413_v6 = vadd.f32 %v2452_v55, %v1402_v20 }
 0x337   : > { %v1247_v43 = vpop.f32.mrf.mxu3 }
 0x338   : > { %v1421_v44 = vadd.f32 %v1413_v6, %v2244_v24  ;;  %v1301_v40 = vadd.f32 %v1300_v27, %v1247_v43 }
 0x33a   : > { %v1429_v47 = vmax.f32 %v1421_v44, 0.0  ;;  %v1392_v48 = vadd.f32 %v1381_v23, %v1301_v40 }
 0x33c   : > { %1437 = vst.msk [vmem:[#allocation2 + $0x28] sm:$0xff] %vm936_vm7, %v1429_v47  ;;  %v1403_v21 = vmul.f32 %v2449_v53, %v1392_v48 }
 0x33e   : > { %v1414_v49 = vadd.f32 %v2452_v55, %v1403_v21 }
 0x33f   : > { %v1249_v51 = vpop.f32.mrf.mxu3 }
 0x340   : > { %v1422_v10 = vadd.f32 %v1414_v49, %v2278_v45  ;;  %v1303_v25 = vadd.f32 %v1302_v50, %v1249_v51 }
 0x342   : > { %v1430_v56 = vmax.f32 %v1422_v10, 0.0  ;;  %v1393_v59 = vadd.f32 %v1383_v54, %v1303_v25 }
 0x344   : > { %1438 = vst.msk [vmem:[#allocation2 + $0x30] sm:$0xff] %vm936_vm7, %v1430_v56  ;;  %v1404_v24 = vmul.f32 %v2449_v53, %v1393_v59 }
 0x346   : > { %v1415_v1 = vadd.f32 %v2452_v55, %v1404_v24 }
 0x348   : > { %v1423_v60 = vadd.f32 %v1415_v1, %v2252_v30  ;;  %1443 = sbr.rel (%p1772_p3) target bundleno = 866 (0x362), region = 68 }
 0x34a   : > { %v1431_v61 = vmax.f32 %v1423_v60, 0.0 }
 0x34c   : > { %1439 = vst.msk [vmem:[#allocation2 + $0x38] sm:$0xff] %vm936_vm7, %v1431_v61 }
 0x34d   : > { %v1444_v45 = vsel %vm936_vm7, %v1424_v11, -inf  ;;  %v1445_v63 = vsel %vm936_vm7, %v1425_v8, -inf  ;;  %v1446_v0 = vsel %vm936_vm7, %v1426_v42, -inf  ;;  %v1448_v53 = vsel %vm936_vm7, %v1427_v32, -inf }
 0x34e   : > { %v1447_v2 = vmax.f32 %v1444_v45, %v1446_v0  ;;  %v1449_v55 = vmax.f32 %v1445_v63, %v1448_v53  ;;  %v1457_v30 = vsel %vm936_vm7, %v1428_v41, -inf  ;;  %v1458_v3 = vsel %vm936_vm7, %v1429_v47, -inf }
 0x34f   : > { %v1459_v4 = vsel %vm936_vm7, %v1430_v56, -inf  ;;  %v1461_v28 = vsel %vm936_vm7, %v1431_v61, -inf  ;;  %vm1472_vm9 = vcmask 1041409   ;;  %vm1475_vm10 = vcmask 254976  }
 0x350   : > { %v1450_v5 = vmax.f32 %v1447_v2, %v1449_v55  ;;  %v1460_v62 = vmax.f32 %v1457_v30, %v1459_v4  ;;  %v1462_v7 = vmax.f32 %v1458_v3, %v1461_v28 }
 0x352   : > { %v1451_v11 = vrot.slane %v1450_v5, 4  ;;  %v1463_v35 = vmax.f32 %v1460_v62, %v1462_v7 }
 0x354   : > { %v1452_v8 = vmax.f32 %v1450_v5, %v1451_v11  ;;  %v1464_v14 = vrot.slane %v1463_v35, 4 }
 0x356   : > { %v1453_v15 = vrot.slane %v1452_v8, 2  ;;  %v1465_v16 = vmax.f32 %v1463_v35, %v1464_v14 }
 0x358   : > { %v1454_v33 = vmax.f32 %v1452_v8, %v1453_v15  ;;  %v1466_v17 = vrot.slane %v1465_v16, 2 }
 0x35a   : > { %v1455_v18 = vrot.slane %v1454_v33, 1  ;;  %v1467_v19 = vmax.f32 %v1465_v16, %v1466_v17 }
 0x35c   : > { %v1456_v42 = vmax.f32 %v1454_v33, %v1455_v18  ;;  %v1468_v22 = vrot.slane %v1467_v19, 1 }
 0x35e   : > { %v1469_v38 = vmax.f32 %v1467_v19, %v1468_v22 }
 0x360   : > { %v1473_v26 = vsel %vm1472_vm9, %v1469_v38, %v1456_v42 }
 0x361   : > { %1476 = vst.msk [vmem:[%s2181_s20] sm:$0x3] %vm1475_vm10, %v1473_v26 }
 0x362 PF: > { %s22_s16 = sadd.s32 1, %s1988_s16   ;;  %s2570_s3 = sld [smem:[#allocation6_spill]] }
 0x363   : > { %p19_p4 = scmp.ge.s32.totalorder %s22_s16, 14   ;;  %s2571_s9 = sld [smem:[#allocation7_spill]] }
 0x364   : > { %s2572_s30 = smov %s1964_s10  ;;  %s2573_s10 = smov %s1968_s11 }
 0x365   : > { %s2574_s11 = smov %s2108_s28  ;;  %s2575_s12 = smov %s1980_s14 }
 0x366   : > { %s2576_s13 = smov %s1984_s15  ;;  %21 = sbr.rel (!%p19_p4) target bundleno = 12 (0xc), region = 125 }
 0x368   : > { %s2577_s14 = smov %s2570_s3 }
 0x369   : > { %s2578_s15 = smov %s2571_s9 }
 0x36b   :  { %1496 = vsyncpa [#allocation4], 1 }
 0x36c   :  { %1498 = vsyncpa [#allocation4 + $0x1], 1 }

</bundles_post_ra>
